<compile_context>
chip_gen: v6e
topology: v6e:2x2x1
jax: 0.10.0
libtpu: 0.0.40
codegen_flags: <defaults>
</compile_context>

<pallas_src>
import jax
import jax.numpy as jnp
from jax import lax
from jax.experimental import pallas as pl
from jax.experimental.pallas import tpu as pltpu

_LANES = 128
_MAX_TILE_ROWS = 2048            # 2048 x 128 f32 = 1 MiB per input block
_VMEM_LIMIT = 32 * 1024 * 1024


def _cdiv(a, b):
    return (a + b - 1) // b


def _plan(rows):
    """(tile_rows, chunks) for reducing a (rows, 128) stream."""
    if rows <= _MAX_TILE_ROWS:
        # Single chunk; block spans the full rows extent (always a legal block
        # shape, even when rows is not a multiple of the sublane tile).
        return rows, 1
    return _MAX_TILE_ROWS, _cdiv(rows, _MAX_TILE_ROWS)


def _lane_view(x):
    """Flatten x, view the 128-aligned prefix as (rows, 128) and return the
    (<128-element) ragged tail separately.  No padded copy is materialized;
    when the length is already a multiple of 128 (the common case) this is
    zero-copy."""
    flat = x.reshape(-1)
    n = flat.shape[0]
    rows = n // _LANES
    if rows == 0:
        return None, flat, 0
    if rows * _LANES == n:
        return flat.reshape(rows, _LANES), flat[:0], rows
    return (flat[: rows * _LANES].reshape(rows, _LANES),
            flat[rows * _LANES:], rows)


# ----------------------------------------------------------------------------
# Kernels: stream terms accumulated into VMEM scratch; (1, 128) partial output
# written only on the last grid step.
# ----------------------------------------------------------------------------
def _make_sq_kernel(rows, tile, chunks):
    ragged = chunks * tile > rows

    def kernel(pred_ref, tgt_ref, out_ref, acc):
        i = pl.program_id(0)

        @pl.when(i == 0)
        def _():
            acc[...] = jnp.zeros_like(acc)

        d = pred_ref[...].astype(jnp.float32) - tgt_ref[...].astype(jnp.float32)
        term = d * d
        if ragged:  # only the ragged-last-block case pays for the mask
            gr = i * tile + lax.broadcasted_iota(jnp.int32, (tile, _LANES), 0)
            term = jnp.where(gr < rows, term, 0.0)
        acc[...] += term

        @pl.when(i == pl.num_programs(0) - 1)
        def _():
            out_ref[...] = jnp.sum(acc[...], axis=0, keepdims=True)

    return kernel


def _make_fused_kernel(rows_c, tile_c, chunks_c, rows_m, tile_m, chunks_m):
    ragged_c = chunks_c * tile_c > rows_c
    ragged_m = chunks_m * tile_m > rows_m

    def kernel(color_ref, rgb_ref, acc_ref, occ_ref,
               out_rgb_ref, out_mask_ref, s_rgb, s_mask):
        i = pl.program_id(0)

        @pl.when(i == 0)
        def _():
            s_rgb[...] = jnp.zeros_like(s_rgb)
            s_mask[...] = jnp.zeros_like(s_mask)

        @pl.when(i < chunks_c)
        def _():
            d = color_ref[...].astype(jnp.float32) - rgb_ref[...].astype(jnp.float32)
            term = d * d
            if ragged_c:
                gr = i * tile_c + lax.broadcasted_iota(jnp.int32, (tile_c, _LANES), 0)
                term = jnp.where(gr < rows_c, term, 0.0)
            s_rgb[...] += term

        @pl.when(i < chunks_m)
        def _():
            occ = occ_ref[...].astype(jnp.float32)
            acc = acc_ref[...].astype(jnp.float32)
            clamped = jnp.where(occ == 1.0, 1.0, acc)   # acc_map[occ == 1] = 1
            term = jnp.abs(clamped - occ)
            if ragged_m:
                gr = i * tile_m + lax.broadcasted_iota(jnp.int32, (tile_m, _LANES), 0)
                term = jnp.where(gr < rows_m, term, 0.0)
            s_mask[...] += term

        @pl.when(i == pl.num_programs(0) - 1)
        def _():
            out_rgb_ref[...] = jnp.sum(s_rgb[...], axis=0, keepdims=True)
            out_mask_ref[...] = jnp.sum(s_mask[...], axis=0, keepdims=True)

    return kernel


# ----------------------------------------------------------------------------
# Drivers
# ----------------------------------------------------------------------------
def _pallas_sq_sum(pred2, tgt2, rows):
    tile, chunks = _plan(rows)
    out = pl.pallas_call(
        _make_sq_kernel(rows, tile, chunks),
        out_shape=jax.ShapeDtypeStruct((1, _LANES), jnp.float32),
        grid_spec=pltpu.PrefetchScalarGridSpec(
            num_scalar_prefetch=0,
            grid=(chunks,),
            in_specs=[pl.BlockSpec((tile, _LANES), lambda i: (i, 0)),
                      pl.BlockSpec((tile, _LANES), lambda i: (i, 0))],
            out_specs=pl.BlockSpec((1, _LANES), lambda i: (0, 0)),
            scratch_shapes=[pltpu.VMEM((tile, _LANES), jnp.float32)],
        ),
        compiler_params=pltpu.CompilerParams(
            dimension_semantics=("arbitrary",),
            vmem_limit_bytes=_VMEM_LIMIT,
        ),
    )(pred2, tgt2)
    return jnp.sum(out)


def _pallas_fused_sums(color2, rgb2, rows_c, acc2, occ2, rows_m):
    tile_c, chunks_c = _plan(rows_c)
    tile_m, chunks_m = _plan(rows_m)
    chunks = max(chunks_c, chunks_m)

    # Streams may have different lengths; clamp the block index for the shorter
    # one (identical index => no re-fetch) and gate its accumulation in-kernel.
    def c_map(i):
        return (jnp.minimum(i, chunks_c - 1), 0)

    def m_map(i):
        return (jnp.minimum(i, chunks_m - 1), 0)

    out_rgb, out_mask = pl.pallas_call(
        _make_fused_kernel(rows_c, tile_c, chunks_c, rows_m, tile_m, chunks_m),
        out_shape=(jax.ShapeDtypeStruct((1, _LANES), jnp.float32),
                   jax.ShapeDtypeStruct((1, _LANES), jnp.float32)),
        grid_spec=pltpu.PrefetchScalarGridSpec(
            num_scalar_prefetch=0,
            grid=(chunks,),
            in_specs=[pl.BlockSpec((tile_c, _LANES), c_map),
                      pl.BlockSpec((tile_c, _LANES), c_map),
                      pl.BlockSpec((tile_m, _LANES), m_map),
                      pl.BlockSpec((tile_m, _LANES), m_map)],
            out_specs=[pl.BlockSpec((1, _LANES), lambda i: (0, 0)),
                       pl.BlockSpec((1, _LANES), lambda i: (0, 0))],
            scratch_shapes=[pltpu.VMEM((tile_c, _LANES), jnp.float32),
                            pltpu.VMEM((tile_m, _LANES), jnp.float32)],
        ),
        compiler_params=pltpu.CompilerParams(
            dimension_semantics=("arbitrary",),
            vmem_limit_bytes=_VMEM_LIMIT,
        ),
    )(color2, rgb2, acc2, occ2)
    return jnp.sum(out_rgb), jnp.sum(out_mask)


# Tiny (<128-element) ragged tails, plain JAX.
def _sq_tail_sum(p, t):
    if p.shape[0] == 0:
        return jnp.float32(0.0)
    d = p.astype(jnp.float32) - t.astype(jnp.float32)
    return jnp.sum(d * d)


def _l1_tail_sum(a, o):
    if a.shape[0] == 0:
        return jnp.float32(0.0)
    a = a.astype(jnp.float32)
    o = o.astype(jnp.float32)
    return jnp.sum(jnp.abs(jnp.where(o == 1.0, 1.0, a) - o))


# ----------------------------------------------------------------------------
# Loss wrappers (forward-pass semantics of the PyTorch module)
# ----------------------------------------------------------------------------
def mse_loss_pallas(pred, tgt):
    """mean((pred - tgt)^2), nn.MSELoss semantics."""
    assert pred.size == tgt.size
    p2, p_tail, rows = _lane_view(pred)
    t2, t_tail, _ = _lane_view(tgt)
    s = _pallas_sq_sum(p2, t2, rows) if rows > 0 else jnp.float32(0.0)
    s = s + _sq_tail_sum(p_tail, t_tail)
    return s / jnp.float32(pred.size)


class _Node:
    def __init__(self, **kw):
        self.__dict__.update(kw)


def make_cfg(loss_with_mask=True):
    return _Node(MODEL=_Node(LOSSwMask=loss_with_mask))


def mse_loss_forward(cfg, inputs, batch):
    """JAX/Pallas equivalent of MSELoss.forward.

    inputs: {'color': (N, 3), 'acc_map': (N,)}
    batch:  {'rgb': (..., 3), 'occupancy': (...)}
    """
    color = inputs['color']
    rgb = batch['rgb'].reshape(-1, 3)
    assert color.size == rgb.size

    if not cfg.MODEL.LOSSwMask:
        return {'loss_rgb': mse_loss_pallas(color, rgb)}

    # TODO(synk): the PyTorch module mutates inputs['acc_map'] in place
    # (acc_map[occupancy == 1] = 1); the clamp is applied functionally here.
    acc_map = inputs['acc_map']
    occupancy = batch['occupancy'].reshape(-1)
    assert acc_map.size == occupancy.size

    c2, c_tail, rows_c = _lane_view(color)
    r2, r_tail, _ = _lane_view(rgb)
    a2, a_tail, rows_m = _lane_view(acc_map)
    o2, o_tail, _ = _lane_view(occupancy)

    if rows_c > 0 and rows_m > 0:
        s_rgb, s_mask = _pallas_fused_sums(c2, r2, rows_c, a2, o2, rows_m)
    elif rows_c > 0:
        s_rgb = _pallas_sq_sum(c2, r2, rows_c)
        s_mask = jnp.float32(0.0)
    else:
        s_rgb = jnp.float32(0.0)
        s_mask = jnp.float32(0.0)

    s_rgb = s_rgb + _sq_tail_sum(c_tail, r_tail)
    s_mask = s_mask + _l1_tail_sum(a_tail, o_tail)

    loss_rgb = s_rgb / jnp.float32(color.size)
    loss_mask = 0.1 * (s_mask / jnp.float32(acc_map.size))
    return {'loss_rgb': loss_rgb, 'loss_mask': loss_mask}


# ----------------------------------------------------------------------------
if __name__ == "__main__":
    key = jax.random.PRNGKey(0)
    k1, k2, k3, k4 = jax.random.split(key, 4)

    B, R = 2, 512          # batch of 2 images, 512 rays each -> N = 1024 rays
    N = B * R

    # Rendered color predictions (N, 3) and ground-truth rgb (B, R, 3).
    color = jax.random.uniform(k1, (N, 3), dtype=jnp.float32)
    rgb = jax.random.uniform(k2, (B, R, 3), dtype=jnp.float32)

    # Accumulated alpha map (N,) and binary occupancy (B, R).
    acc_map = jax.random.uniform(k3, (N,), dtype=jnp.float32)
    occupancy = (jax.random.uniform(k4, (B, R)) > 0.5).astype(jnp.float32)

    cfg = make_cfg(loss_with_mask=True)
    inputs = {'color': color, 'acc_map': acc_map}
    batch = {'rgb': rgb, 'occupancy': occupancy}

    out = mse_loss_forward(cfg, inputs, batch)
    jax.block_until_ready(out)

    # Reference check in plain JAX (same semantics as the PyTorch module).
    ref_rgb = jnp.mean((color - rgb.reshape(-1, 3)) ** 2)
    occ_flat = occupancy.reshape(-1)
    acc_clamped = jnp.where(occ_flat == 1.0, 1.0, acc_map)
    ref_mask = 0.1 * jnp.mean(jnp.abs(acc_clamped - occ_flat))

    assert jnp.allclose(out['loss_rgb'], ref_rgb, rtol=1e-5, atol=1e-6)
    assert jnp.allclose(out['loss_mask'], ref_mask, rtol=1e-5, atol=1e-6)

    print("KERNEL_OK")
</pallas_src>

<mosaic_0001>
module attributes {stable_mosaic.version = 11 : i64} {
  func.func @kernel(%arg0: i32, %arg1: memref<24x128xf32, #tpu.memory_space<vmem>>, %arg2: memref<24x128xf32, #tpu.memory_space<vmem>>, %arg3: memref<8x128xf32, #tpu.memory_space<vmem>>, %arg4: memref<8x128xf32, #tpu.memory_space<vmem>>, %arg5: memref<1x128xf32, #tpu.memory_space<vmem>>, %arg6: memref<1x128xf32, #tpu.memory_space<vmem>>, %arg7: memref<24x128xf32, #tpu.memory_space<vmem>>, %arg8: memref<8x128xf32, #tpu.memory_space<vmem>>) attributes {dimension_semantics = [#tpu.dimension_semantics<arbitrary>], iteration_bounds = array<i64: 1>, scalar_prefetch = 0 : i64, scratch_operands = 2 : i64, tpu.core_type = #tpu.core_type<tc>, window_params = [{transform_indices = @transform_0, window_bounds = array<i64: 24, 128>}, {transform_indices = @transform_1, window_bounds = array<i64: 24, 128>}, {transform_indices = @transform_2, window_bounds = array<i64: 8, 128>}, {transform_indices = @transform_3, window_bounds = array<i64: 8, 128>}, {pipeline_mode = #tpu.pipeline_mode<synchronous>, transform_indices = @transform_4, window_bounds = array<i64: 1, 128>}, {pipeline_mode = #tpu.pipeline_mode<synchronous>, transform_indices = @transform_5, window_bounds = array<i64: 1, 128>}]} {
    %c0_i32 = arith.constant 0 : i32
    %0 = arith.cmpi eq, %arg0, %c0_i32 : i32
    %1 = arith.extui %0 : i1 to i32
    %c0_i32_0 = arith.constant 0 : i32
    %2 = arith.cmpi ne, %1, %c0_i32_0 : i32
    scf.if %2 {
      %cst = arith.constant 0.000000e+00 : f32
      %12 = vector.broadcast %cst : f32 to vector<24x128xf32>
      %c0 = arith.constant 0 : index
      %c0_6 = arith.constant 0 : index
      %13 = vector.load %arg7[%c0, %c0_6] : memref<24x128xf32, #tpu.memory_space<vmem>>, vector<24x128xf32>
      tpu.vector_store %arg7[%c0, %c0_6], %12 {strides = array<i32>} : memref<24x128xf32, #tpu.memory_space<vmem>>, vector<24x128xf32>,
      %cst_7 = arith.constant 0.000000e+00 : f32
      %14 = vector.broadcast %cst_7 : f32 to vector<8x128xf32>
      %c0_8 = arith.constant 0 : index
      %c0_9 = arith.constant 0 : index
      %15 = vector.load %arg8[%c0_8, %c0_9] : memref<8x128xf32, #tpu.memory_space<vmem>>, vector<8x128xf32>
      tpu.vector_store %arg8[%c0_8, %c0_9], %14 {strides = array<i32>} : memref<8x128xf32, #tpu.memory_space<vmem>>, vector<8x128xf32>,
    } else {
    }
    %c1_i32 = arith.constant 1 : i32
    %3 = arith.cmpi slt, %arg0, %c1_i32 : i32
    %4 = arith.extui %3 : i1 to i32
    %c0_i32_1 = arith.constant 0 : i32
    %5 = arith.cmpi ne, %4, %c0_i32_1 : i32
    scf.if %5 {
      %c0 = arith.constant 0 : index
      %c0_6 = arith.constant 0 : index
      %12 = vector.load %arg1[%c0, %c0_6] : memref<24x128xf32, #tpu.memory_space<vmem>>, vector<24x128xf32>
      %c0_7 = arith.constant 0 : index
      %c0_8 = arith.constant 0 : index
      %13 = vector.load %arg2[%c0_7, %c0_8] : memref<24x128xf32, #tpu.memory_space<vmem>>, vector<24x128xf32>
      %14 = arith.subf %12, %13 : vector<24x128xf32>
      %15 = arith.mulf %14, %14 : vector<24x128xf32>
      %c0_9 = arith.constant 0 : index
      %c0_10 = arith.constant 0 : index
      %16 = vector.load %arg7[%c0_9, %c0_10] : memref<24x128xf32, #tpu.memory_space<vmem>>, vector<24x128xf32>
      %17 = arith.addf %16, %15 : vector<24x128xf32>
      %c0_11 = arith.constant 0 : index
      %c0_12 = arith.constant 0 : index
      %18 = vector.load %arg7[%c0_11, %c0_12] : memref<24x128xf32, #tpu.memory_space<vmem>>, vector<24x128xf32>
      tpu.vector_store %arg7[%c0_11, %c0_12], %17 {strides = array<i32>} : memref<24x128xf32, #tpu.memory_space<vmem>>, vector<24x128xf32>,
    } else {
    }
    %c1_i32_2 = arith.constant 1 : i32
    %6 = arith.cmpi slt, %arg0, %c1_i32_2 : i32
    %7 = arith.extui %6 : i1 to i32
    %c0_i32_3 = arith.constant 0 : i32
    %8 = arith.cmpi ne, %7, %c0_i32_3 : i32
    scf.if %8 {
      %c0 = arith.constant 0 : index
      %c0_6 = arith.constant 0 : index
      %12 = vector.load %arg4[%c0, %c0_6] : memref<8x128xf32, #tpu.memory_space<vmem>>, vector<8x128xf32>
      %c0_7 = arith.constant 0 : index
      %c0_8 = arith.constant 0 : index
      %13 = vector.load %arg3[%c0_7, %c0_8] : memref<8x128xf32, #tpu.memory_space<vmem>>, vector<8x128xf32>
      %cst = arith.constant 1.000000e+00 : f32
      %14 = vector.broadcast %cst : f32 to vector<8x128xf32>
      %15 = arith.cmpf oeq, %12, %14 : vector<8x128xf32>
      %cst_9 = arith.constant 1.000000e+00 : f32
      %16 = vector.broadcast %cst_9 : f32 to vector<8x128xf32>
      %17 = arith.select %15, %16, %13 : vector<8x128xi1>, vector<8x128xf32>
      %18 = arith.subf %17, %12 : vector<8x128xf32>
      %19 = math.absf %18 : vector<8x128xf32>
      %c0_10 = arith.constant 0 : index
      %c0_11 = arith.constant 0 : index
      %20 = vector.load %arg8[%c0_10, %c0_11] : memref<8x128xf32, #tpu.memory_space<vmem>>, vector<8x128xf32>
      %21 = arith.addf %20, %19 : vector<8x128xf32>
      %c0_12 = arith.constant 0 : index
      %c0_13 = arith.constant 0 : index
      %22 = vector.load %arg8[%c0_12, %c0_13] : memref<8x128xf32, #tpu.memory_space<vmem>>, vector<8x128xf32>
      tpu.vector_store %arg8[%c0_12, %c0_13], %21 {strides = array<i32>} : memref<8x128xf32, #tpu.memory_space<vmem>>, vector<8x128xf32>,
    } else {
    }
    %c0_i32_4 = arith.constant 0 : i32
    %9 = arith.cmpi eq, %arg0, %c0_i32_4 : i32
    %10 = arith.extui %9 : i1 to i32
    %c0_i32_5 = arith.constant 0 : i32
    %11 = arith.cmpi ne, %10, %c0_i32_5 : i32
    scf.if %11 {
      %c0 = arith.constant 0 : index
      %c0_6 = arith.constant 0 : index
      %12 = vector.load %arg7[%c0, %c0_6] : memref<24x128xf32, #tpu.memory_space<vmem>>, vector<24x128xf32>
      %cst = arith.constant dense<0.000000e+00> : vector<128xf32>
      %13 = vector.multi_reduction <add>, %12, %cst [0] : vector<24x128xf32> to vector<128xf32>
      %14 = vector.shape_cast %13 : vector<128xf32> to vector<1x128xf32>
      %c0_7 = arith.constant 0 : index
      %c0_8 = arith.constant 0 : index
      %15 = vector.load %arg5[%c0_7, %c0_8] : memref<1x128xf32, #tpu.memory_space<vmem>>, vector<1x128xf32>
      tpu.vector_store %arg5[%c0_7, %c0_8], %14 {strides = array<i32>} : memref<1x128xf32, #tpu.memory_space<vmem>>, vector<1x128xf32>,
      %c0_9 = arith.constant 0 : index
      %c0_10 = arith.constant 0 : index
      %16 = vector.load %arg8[%c0_9, %c0_10] : memref<8x128xf32, #tpu.memory_space<vmem>>, vector<8x128xf32>
      %cst_11 = arith.constant dense<0.000000e+00> : vector<128xf32>
      %17 = vector.multi_reduction <add>, %16, %cst_11 [0] : vector<8x128xf32> to vector<128xf32>
      %18 = vector.shape_cast %17 : vector<128xf32> to vector<1x128xf32>
      %c0_12 = arith.constant 0 : index
      %c0_13 = arith.constant 0 : index
      %19 = vector.load %arg6[%c0_12, %c0_13] : memref<1x128xf32, #tpu.memory_space<vmem>>, vector<1x128xf32>
      tpu.vector_store %arg6[%c0_12, %c0_13], %18 {strides = array<i32>} : memref<1x128xf32, #tpu.memory_space<vmem>>, vector<1x128xf32>,
    } else {
    }
    return
  }
  func.func @transform_0(%arg0: i32) -> (i32, i32) {
    %c0_i32 = arith.constant 0 : i32
    %0 = arith.minsi %arg0, %c0_i32 : i32
    %c0_i32_0 = arith.constant 0 : i32
    %c0_i32_1 = arith.constant 0 : i32
    return %0, %c0_i32_0 : i32, i32
  }
  func.func @transform_1(%arg0: i32) -> (i32, i32) {
    %c0_i32 = arith.constant 0 : i32
    %0 = arith.minsi %arg0, %c0_i32 : i32
    %c0_i32_0 = arith.constant 0 : i32
    %c0_i32_1 = arith.constant 0 : i32
    return %0, %c0_i32_0 : i32, i32
  }
  func.func @transform_2(%arg0: i32) -> (i32, i32) {
    %c0_i32 = arith.constant 0 : i32
    %0 = arith.minsi %arg0, %c0_i32 : i32
    %c0_i32_0 = arith.constant 0 : i32
    %c0_i32_1 = arith.constant 0 : i32
    return %0, %c0_i32_0 : i32, i32
  }
  func.func @transform_3(%arg0: i32) -> (i32, i32) {
    %c0_i32 = arith.constant 0 : i32
    %0 = arith.minsi %arg0, %c0_i32 : i32
    %c0_i32_0 = arith.constant 0 : i32
    %c0_i32_1 = arith.constant 0 : i32
    return %0, %c0_i32_0 : i32, i32
  }
  func.func @transform_4(%arg0: i32) -> (i32, i32) {
    %c0_i32 = arith.constant 0 : i32
    %c0_i32_0 = arith.constant 0 : i32
    %c0_i32_1 = arith.constant 0 : i32
    return %c0_i32, %c0_i32_0 : i32, i32
  }
  func.func @transform_5(%arg0: i32) -> (i32, i32) {
    %c0_i32 = arith.constant 0 : i32
    %c0_i32_0 = arith.constant 0 : i32
    %c0_i32_1 = arith.constant 0 : i32
    return %c0_i32, %c0_i32_0 : i32, i32
  }
}

</mosaic_0001>

<bundles_post_ra>
// kernel: tpu_custom_call.1
= control target key start
LH: loop header
LB: loop body
LE: loop exit
PB: predicated region body
PF: predicated region fallthrough
CT: control target
= control target key end

     0   :  { %11 = vsyncpa [#allocation5], 0  ;;  %s362_s0 = inlined_call_operand.hbm [shape: f32[24,128], index: 0, kind: input, shape index: {}]   ;;  %s363_s1 = inlined_call_operand.hbm [shape: f32[24,128], index: 1, kind: input, shape index: {}]   ;;  %s364_s2 = inlined_call_operand.hbm [shape: f32[8,128], index: 2, kind: input, shape index: {}]   ;;  %s365_s3 = inlined_call_operand.hbm [shape: f32[8,128], index: 3, kind: input, shape index: {}]   ;;  %s366_s4 = inlined_call_operand.hbm [shape: f32[1,128], index: 4, kind: output, shape index: {0}]   ;;  %s367_s5 = inlined_call_operand.hbm [shape: f32[1,128], index: 5, kind: output, shape index: {1}]  }
   0x1   :  { %12 = vsyncpa [#allocation8], 0 }
   0x2   :  { %13 = vsyncpa [#allocation11], 0 }
   0x3   :  { %14 = vsyncpa [#allocation6], 0 }
   0x4   :  { %15 = vsyncpa [#allocation14], 0  ;;  %s306_s18 = smov [#allocation7]   ;;  %s307_s20 = smov [#allocation4]  }
   0x5   :  { %s33_s19 = sshll.u32 %s306_s18, 4  ;;  %s21_s21 = sshll.u32 %s307_s20, 4  ;;  %s34_s19 = int_to_ptr.vmem [resolvable:$true] %s33_s19  ;;  %s22_s21 = int_to_ptr.vmem [resolvable:$true] %s21_s21 }
   0x6   :  { %s184_s22 = scalar_lea.vmem %s34_s19, 384  ;;  %p189_p1 = scmp.lt.s32.totalorder %s34_s19, %s34_s19 }
   0x7   :  { %p185_p0 = scmp.ne.s32.totalorder %s34_s19, %s184_s22  ;;  %p190_p2 = scmp.lt.s32.totalorder %s184_s22, %s184_s22 }
   0x9   :  { %p191_p3 = por %p190_p2, %p189_p1 }
   0xb   :  { %p192_p4 = pnand %p191_p3, %p185_p0 }
   0xd   :  { %195 = shalt.err (!%p192_p4)
}
   0xe   :  { %s308_s23 = smov 128   ;;  %s309_s24 = smov 8  }
   0xf   :  { %39 = dma.hbm_to_vmem [thread:$0]  %s363_s1, 384, %s34_s19, [#allocation8], %s308_s23, %s308_s23, %s309_s24  }
  0x10   :  { %s204_s27 = scalar_lea.vmem %s22_s21, 384  ;;  %p209_p6 = scmp.lt.s32.totalorder %s22_s21, %s22_s21 }
  0x11   :  { %p205_p5 = scmp.ne.s32.totalorder %s22_s21, %s204_s27  ;;  %p210_p7 = scmp.lt.s32.totalorder %s204_s27, %s204_s27 }
  0x13   :  { %p211_p8 = por %p210_p7, %p209_p6 }
  0x15   :  { %p212_p9 = pnand %p211_p8, %p205_p5 }
  0x17   :  { %215 = shalt.err (!%p212_p9)
}
  0x18   :  { %27 = dma.hbm_to_vmem [thread:$0]  %s362_s0, 384, %s22_s21, [#allocation5], %s308_s23, %s308_s23, %s309_s24  }
  0x19   :  { %s310_s30 = smov [#allocation9]   ;;  %s311_s7 = smov [#allocation10]  }
  0x1a   :  { %s46_s6 = sshll.u32 %s310_s30, 4  ;;  %s56_s8 = sshll.u32 %s311_s7, 4  ;;  %s47_s6 = int_to_ptr.vmem [resolvable:$true] %s46_s6  ;;  %s57_s8 = int_to_ptr.vmem [resolvable:$true] %s56_s8 }
  0x1b   :  { %s224_s9 = scalar_lea.vmem %s47_s6, 128  ;;  %p229_p11 = scmp.lt.s32.totalorder %s47_s6, %s47_s6 }
  0x1c   :  { %p225_p10 = scmp.ne.s32.totalorder %s47_s6, %s224_s9  ;;  %p230_p12 = scmp.lt.s32.totalorder %s224_s9, %s224_s9 }
  0x1e   :  { %p231_p13 = por %p230_p12, %p229_p11 }
  0x20   :  { %p232_p0 = pnand %p231_p13, %p225_p10 }
  0x22   :  { %235 = shalt.err (!%p232_p0)
}
  0x23   :  { %49 = dma.hbm_to_vmem [thread:$0]  %s364_s2, 128, %s47_s6, [#allocation8]  }
  0x24   :  { %s244_s11 = scalar_lea.vmem %s57_s8, 128  ;;  %p249_p2 = scmp.lt.s32.totalorder %s57_s8, %s57_s8 }
  0x25   :  { %p245_p1 = scmp.ne.s32.totalorder %s57_s8, %s244_s11  ;;  %p250_p3 = scmp.lt.s32.totalorder %s244_s11, %s244_s11 }
  0x27   :  { %p251_p4 = por %p250_p3, %p249_p2 }
  0x29   :  { %p252_p5 = pnand %p251_p4, %p245_p1 }
  0x2b   :  { %255 = shalt.err (!%p252_p5)
}
  0x2c   :  { %59 = dma.hbm_to_vmem [thread:$0]  %s365_s3, 128, %s57_s8, [#allocation11]  }
  0x2d   :  { %296 = dma.done.wait [#allocation5], 384  }
  0x2e   :  { %297 = vsyncadd [#allocation5], 4294966912 }
  0x2f   :  { %298 = dma.done.wait [#allocation8], 512  }
  0x30   :  { %299 = vsyncadd [#allocation8], 4294966784 }
  0x31   :  { %300 = dma.done.wait [#allocation11], 128  }
  0x32   :  { %301 = vsyncadd [#allocation11], 4294967168  ;;  %v84_v0 = vld [vmem:[#allocation4] sm:$0xff]  ;;  %v85_v1 = vld [vmem:[#allocation4 + $0x8] sm:$0xff]  ;;  %s312_s2 = smov [#allocation13]   ;;  %s313_s13 = smov [#allocation12]  }
  0x33   :  { %v86_v2 = vld [vmem:[#allocation4 + $0x10] sm:$0xff]  ;;  %v87_v3 = vld [vmem:[#allocation7] sm:$0xff]  ;;  %v88_v4 = vld [vmem:[#allocation7 + $0x8] sm:$0xff]  ;;  %s153_s3 = sshll.u32 %s312_s2, 4  ;;  %s143_s14 = sshll.u32 %s313_s13, 4  ;;  %s154_s3 = int_to_ptr.vmem [resolvable:$true] %s153_s3  ;;  %s144_s14 = int_to_ptr.vmem [resolvable:$true] %s143_s14 }
  0x34   :  { %v89_v5 = vld [vmem:[#allocation7 + $0x10] sm:$0xff]  ;;  %v90_v6 = vsub.f32 %v84_v0, %v87_v3  ;;  %v91_v7 = vsub.f32 %v85_v1, %v88_v4  ;;  %v105_v9 = vld [vmem:[#allocation10] sm:$0xff]  ;;  %v106_v10 = vld [vmem:[#allocation9] sm:$0xff]  ;;  %s256_s15 = scalar_lea.vmem %s154_s3, 16  ;;  %s260_s16 = scalar_lea.vmem %s154_s3, 32 }
  0x35   :  { %v92_v8 = vsub.f32 %v86_v2, %v89_v5  ;;  %vm107_vm0 = vcmp.eq.f32.partialorder %v105_v9, 1.0  ;;  %p257_p6 = scmp.ne.s32.totalorder %s154_s3, %s256_s15  ;;  %p261_p7 = scmp.lt.s32.totalorder %s154_s3, %s154_s3 }
  0x36   :  { %v93_v11 = vmul.f32 %v90_v6, %v90_v6  ;;  %v94_v12 = vmul.f32 %v91_v7, %v91_v7  ;;  %v108_v14 = vsel %vm107_vm0, 1.0, %v106_v10  ;;  %p262_p8 = scmp.lt.s32.totalorder %s260_s16, %s256_s15 }
  0x37   :  { %v95_v13 = vmul.f32 %v92_v8, %v92_v8  ;;  %v109_v15 = vsub.f32 %v108_v14, %v105_v9 }
  0x38   :  { %v120_v16 = vadd.f32 %v94_v12, %v93_v11  ;;  %p263_p9 = por %p262_p8, %p261_p7 }
  0x39   :  { %v110_v17 = vand.u32 2147483647, %v109_v15 }
  0x3a   :  { %v121_v18 = vadd.f32 %v120_v16, %v95_v13  ;;  %p264_p10 = pnand %p263_p9, %p257_p6 }
  0x3b   :  { %v130_v19 = vrot.slane %v110_v17, 4 }
  0x3c   :  { %v122_v20 = vrot.slane %v121_v18, 4 }
  0x3d   :  { %v131_v21 = vadd.f32 %v130_v19, %v110_v17 }
  0x3e   :  { %v123_v22 = vadd.f32 %v122_v20, %v121_v18 }
  0x3f   :  { %v132_v23 = vrot.slane %v131_v21, 2 }
  0x40   :  { %v124_v24 = vrot.slane %v123_v22, 2 }
  0x41   :  { %v133_v25 = vadd.f32 %v132_v23, %v131_v21 }
  0x42   :  { %v125_v26 = vadd.f32 %v124_v24, %v123_v22 }
  0x43   :  { %v134_v27 = vrot.slane %v133_v25, 1 }
  0x44   :  { %v126_v28 = vrot.slane %v125_v26, 1 }
  0x45   :  { %v135_v29 = vadd.f32 %v134_v27, %v133_v25 }
  0x46   :  { %v127_v30 = vadd.f32 %v126_v28, %v125_v26 }
  0x47   :  { %136 = vst [vmem:[#allocation13] sm:$0x1] %v135_v29 }
  0x48   :  { %128 = vst [vmem:[#allocation12] sm:$0x1] %v127_v30 }
  0x49   :  { %267 = shalt.err (!%p264_p10)
}
  0x4a   :  { %156 = dma.vmem_to_hbm [thread:$0]  %s154_s3, 16, %s367_s5, [#allocation14]  }
  0x4b   :  { %s276_s19 = scalar_lea.vmem %s144_s14, 16  ;;  %s280_s20 = scalar_lea.vmem %s144_s14, 32 }
  0x4c   :  { %p277_p11 = scmp.ne.s32.totalorder %s144_s14, %s276_s19  ;;  %p281_p12 = scmp.lt.s32.totalorder %s144_s14, %s144_s14 }
  0x4d   :  { %p282_p13 = scmp.lt.s32.totalorder %s280_s20, %s276_s19 }
  0x4f   :  { %p283_p0 = por %p282_p13, %p281_p12 }
  0x51   :  { %p284_p1 = pnand %p283_p0, %p277_p11 }
  0x53   :  { %287 = shalt.err (!%p284_p1)
}
  0x54   :  { %146 = dma.vmem_to_hbm [thread:$0]  %s144_s14, 16, %s366_s4, [#allocation6]  }
  0x55   :  { %302 = dma.done.wait [#allocation6], 16  }
  0x56   :  { %303 = vsyncadd [#allocation6], 4294967280 }
  0x57   :  { %304 = dma.done.wait [#allocation14], 16  }
  0x58   :  { %305 = vsyncadd [#allocation14], 4294967280 }
  0x59   :  { %163 = vsyncpa [#allocation5], 1 }
  0x5a   :  { %164 = vsyncpa [#allocation8], 1 }
  0x5b   :  { %165 = vsyncpa [#allocation11], 1 }
  0x5c   :  { %166 = vsyncpa [#allocation6], 1 }
  0x5d   :  { %167 = vsyncpa [#allocation14], 1 }

</bundles_post_ra>
